<compile_context>
chip_gen: v6e
topology: v6e:2x2x1
jax: 0.10.0
libtpu: 0.0.40
codegen_flags: <defaults>
</compile_context>

<pallas_src>
import functools

import jax
import jax.numpy as jnp
from jax import lax
from jax.experimental import pallas as pl
from jax.experimental.pallas import tpu as pltpu

_LANE = 128


def _round_up(n, m):
  return ((n + m - 1) // m) * m


def _choose_batch_tile(batch, batch_tile):
  """Rows per grid step: multiple of 128, large, and >= 2 steps when possible."""
  # Round the request to a multiple of 128 (keeps BlockSpec sublane dims legal
  # regardless of what the caller passes) and cap it so the VMEM working set
  # stays well under v7x's 64 MiB physical VMEM (see _vmem_limit_bytes).
  tile = _round_up(max(int(batch_tile), _LANE), _LANE)
  tile = min(tile, 12288)
  b128 = _round_up(batch, _LANE)
  tile = min(tile, b128)
  # Guarantee >= 2 grid steps when the batch allows it so the "parallel" grid
  # axis can shard across v7x's two TensorCores (neutral on v5e / v6e).
  if tile >= b128 and b128 >= 2 * _LANE:
    tile = _round_up(b128 // 2, _LANE)
  return tile


def _vmem_limit_bytes(tile):
  """Scoped-VMEM request sized to the double-buffered blocks + temporaries."""
  # Everything lane-pads to 128: the x block (f32) and out block (f32) cost
  # 512 B/row per buffer, double-buffered, plus in-kernel temporaries (bf16 x,
  # f32 h, products).  ~4 KiB/row upper bound + headroom; clamp below v7x's
  # 64 MiB physical VMEM.
  per_row = 4096
  est = tile * per_row + (4 << 20)
  return int(min(max(est, 32 << 20), 56 << 20))


def _neurd_mlp_kernel(x_ref, w1t_ref, c_ref, b2_ref, out_ref):
  """Fused MLP on one batch tile (natural row-major layout, rows on sublanes).

  x_ref  : [T, F]  f32   input rows (cast to bf16 on-chip)
  w1t_ref: [F, H]  bf16  first Linear weight, transposed to [in, out]
  c_ref  : [2, H]  f32   row 0 = b1 (first bias), row 1 = w2 (output weight)
  b2_ref : [1]     f32   output Linear bias (SMEM scalar)
  out_ref: [T, 1]  f32   regret estimates
  """
  x = x_ref[...].astype(jnp.bfloat16)
  # Layer 1 on the MXU: [T, F] @ [F, H] -> [T, H], f32 accumulation.
  h = jnp.dot(x, w1t_ref[...], preferred_element_type=jnp.float32)
  h = jnp.maximum(h + c_ref[0:1, :], 0.0)                    # bias + ReLU (VPU)
  # Layer 2 (H -> 1): VPU multiply + cross-lane reduction (XLU).  Avoids a
  # degenerate N=1 MXU matmul.
  y = jnp.sum(h * c_ref[1:2, :], axis=1, keepdims=True) + b2_ref[0]
  out_ref[...] = y.astype(out_ref.dtype)


@functools.partial(jax.jit, static_argnames=("batch_tile",))
def deep_neurd_forward(x, w1_pt, b1, w2_pt, b2, *, batch_tile=8192):
  """Evaluates DeepNeurdModel.forward(x, training=False) via a Pallas kernel.

  Args:
    x:     [B, F] float32 model input (any B; ragged tiles handled by Pallas).
    w1_pt: [H, F] first Linear weight, native PyTorch [out, in] layout.
    b1:    [H]    first Linear bias.
    w2_pt: [1, H] output Linear weight, native PyTorch layout.
    b2:    [1]    output Linear bias.
    batch_tile: requested rows per grid step (rounded to 128, capped at 12288).

  Returns:
    [B, 1] float32 regrets (== y[:, :1] since autoencode=False).
  """
  B, F = x.shape
  H = w1_pt.shape[0]

  tile = _choose_batch_tile(B, batch_tile)
  grid = (pl.cdiv(B, tile),)   # ragged last block is clipped by Pallas

  # Tiny parameter plumbing only (a few KB); x itself is untouched in HBM.
  w1t = jnp.transpose(w1_pt).astype(jnp.bfloat16)                    # [F, H]
  consts = jnp.stack(
      [b1.astype(jnp.float32), w2_pt.reshape(H).astype(jnp.float32)])  # [2, H]
  b2_s = b2.reshape(1).astype(jnp.float32)                           # [1] SMEM

  # TODO(synk): for strict HBM-roofline chasing, repack x as [B//8, 8*F] (a
  # free contiguous reshape) with a block-diagonal [8F, 8H] weight so every
  # vreg is fully lane-dense; and on v7x optionally accept fp8 activations.
  # Not done here per review guidance to leave the compute structure alone.
  out = pl.pallas_call(
      _neurd_mlp_kernel,
      out_shape=jax.ShapeDtypeStruct((B, 1), jnp.float32),
      grid=grid,
      in_specs=[
          pl.BlockSpec((tile, F), lambda i: (i, 0)),     # batch-tiled x rows
          pl.BlockSpec((F, H), lambda i: (0, 0)),        # weights resident
          pl.BlockSpec((2, H), lambda i: (0, 0)),        # b1 / w2 folded
          pl.BlockSpec(memory_space=pltpu.MemorySpace.SMEM),  # b2 scalar
      ],
      out_specs=pl.BlockSpec((tile, 1), lambda i: (i, 0)),
      compiler_params=pltpu.CompilerParams(
          dimension_semantics=("parallel",),
          vmem_limit_bytes=_vmem_limit_bytes(tile)),
  )(x.astype(jnp.float32), w1t, consts, b2_s)
  return out


def init_params(key, num_features, num_hidden_units):
  """Deterministic synthetic parameters in native nn.Linear ([out, in]) layout."""
  k1, k2, k3, k4 = jax.random.split(key, 4)
  # Linear(F -> H)
  w1_pt = jax.random.normal(k1, (num_hidden_units, num_features), jnp.float32)
  w1_pt = w1_pt / jnp.sqrt(jnp.float32(num_features))
  b1_pt = jax.random.normal(k2, (num_hidden_units,), jnp.float32) * 0.01
  # Linear(H -> 1)  (autoencode=False => output width 1)
  w2_pt = jax.random.normal(k3, (1, num_hidden_units), jnp.float32)
  w2_pt = w2_pt / jnp.sqrt(jnp.float32(num_hidden_units))
  b2_pt = jax.random.normal(k4, (1,), jnp.float32) * 0.01
  return w1_pt, b1_pt, w2_pt, b2_pt


def reference_forward(x, w1_pt, b1, w2_pt, b2):
  """Pure-JAX reference with matching numerics (bf16 matmul inputs, f32 rest)."""
  xb = x.astype(jnp.bfloat16).astype(jnp.float32)
  w1 = w1_pt.astype(jnp.bfloat16).astype(jnp.float32)
  h = jnp.dot(xb, w1.T, precision=lax.Precision.HIGHEST) + b1[None, :]
  h = jnp.maximum(h, 0.0)
  y = jnp.sum(h * w2_pt.reshape(1, -1), axis=1, keepdims=True) + b2.reshape(1, 1)
  return y  # output width is already 1 (autoencode=False), so y == y[:, :1]


if __name__ == "__main__":
  # Small shapes implied by the module: rcfr.num_features(game) -> F,
  # num_hidden_units -> H, a batch of infostate feature vectors -> B.
  F, H = 16, 32
  key = jax.random.PRNGKey(0)
  k_x, k_x2, k_p = jax.random.split(key, 3)
  w1_pt, b1, w2_pt, b2 = init_params(k_p, F, H)

  # Case 1: ragged batch (B=300), default tile selection
  #   -> tile=256, grid=(2,), second block clipped at row 300.
  x = jax.random.normal(k_x, (300, F), jnp.float32)
  ref = reference_forward(x, w1_pt, b1, w2_pt, b2)
  out = jax.block_until_ready(deep_neurd_forward(x, w1_pt, b1, w2_pt, b2))
  assert out.shape == (300, 1), out.shape
  assert jnp.allclose(out, ref, atol=2e-4, rtol=2e-4), (
      float(jnp.max(jnp.abs(out - ref))))

  # Case 2: small explicit tile -> grid=(3,), last block ragged.
  out_tiled = jax.block_until_ready(
      deep_neurd_forward(x, w1_pt, b1, w2_pt, b2, batch_tile=128))
  assert out_tiled.shape == (300, 1), out_tiled.shape
  assert jnp.allclose(out_tiled, ref, atol=2e-4, rtol=2e-4), (
      float(jnp.max(jnp.abs(out_tiled - ref))))

  # Case 3: tile-aligned batch (B=512) -> two aligned 256-row steps.
  x2 = jax.random.normal(k_x2, (512, F), jnp.float32)
  ref2 = reference_forward(x2, w1_pt, b1, w2_pt, b2)
  out2 = jax.block_until_ready(deep_neurd_forward(x2, w1_pt, b1, w2_pt, b2))
  assert out2.shape == (512, 1), out2.shape
  assert jnp.allclose(out2, ref2, atol=2e-4, rtol=2e-4), (
      float(jnp.max(jnp.abs(out2 - ref2))))

  print("KERNEL_OK")
</pallas_src>

<mosaic_0001>
module attributes {stable_mosaic.version = 11 : i64} {
  func.func @_neurd_mlp_kernel(%arg0: i32, %arg1: memref<256x16xf32, #tpu.memory_space<vmem>>, %arg2: memref<16x32xbf16, #tpu.memory_space<vmem>>, %arg3: memref<2x32xf32, #tpu.memory_space<vmem>>, %arg4: memref<1xf32, #tpu.memory_space<smem>>, %arg5: memref<256x1xf32, #tpu.memory_space<vmem>>) attributes {dimension_semantics = [#tpu.dimension_semantics<parallel>], iteration_bounds = array<i64: 2>, scalar_prefetch = 0 : i64, scratch_operands = 0 : i64, tpu.core_type = #tpu.core_type<tc>, window_params = [{transform_indices = @transform_0, window_bounds = array<i64: 256, 16>}, {pipeline_mode = #tpu.pipeline_mode<synchronous>, transform_indices = @transform_1, window_bounds = array<i64: 16, 32>}, {pipeline_mode = #tpu.pipeline_mode<synchronous>, transform_indices = @transform_2, window_bounds = array<i64: 2, 32>}, {transform_indices = @transform_3, window_bounds = array<i64: 1>}, {transform_indices = @transform_4, window_bounds = array<i64: 256, 1>}]} {
    %c0 = arith.constant 0 : index
    %c0_0 = arith.constant 0 : index
    %0 = vector.load %arg1[%c0, %c0_0] : memref<256x16xf32, #tpu.memory_space<vmem>>, vector<256x16xf32>
    %1 = arith.truncf %0 : vector<256x16xf32> to vector<256x16xbf16>
    %c0_1 = arith.constant 0 : index
    %c0_2 = arith.constant 0 : index
    %2 = vector.load %arg2[%c0_1, %c0_2] : memref<16x32xbf16, #tpu.memory_space<vmem>>, vector<16x32xbf16>
    %cst = arith.constant dense<0.000000e+00> : vector<256x32xf32>
    %3 = tpu.matmul %1, %2, %cst {dimension_numbers = #tpu.dot_dimension_numbers<[1], [0], [0], [1], [0, 0, 1, 1], [], []>} : vector<256x16xbf16>, vector<16x32xbf16>, vector<256x32xf32> -> vector<256x32xf32>
    %c0_3 = arith.constant 0 : index
    %c0_4 = arith.constant 0 : index
    %4 = vector.load %arg3[%c0_3, %c0_4] : memref<2x32xf32, #tpu.memory_space<vmem>>, vector<1x32xf32>
    %5 = vector.broadcast %4 : vector<1x32xf32> to vector<256x32xf32>
    %6 = arith.addf %3, %5 : vector<256x32xf32>
    %cst_5 = arith.constant 0.000000e+00 : f32
    %7 = vector.broadcast %cst_5 : f32 to vector<256x32xf32>
    %8 = arith.maximumf %6, %7 : vector<256x32xf32>
    %c1 = arith.constant 1 : index
    %c0_6 = arith.constant 0 : index
    %9 = vector.load %arg3[%c1, %c0_6] : memref<2x32xf32, #tpu.memory_space<vmem>>, vector<1x32xf32>
    %10 = vector.broadcast %9 : vector<1x32xf32> to vector<256x32xf32>
    %11 = arith.mulf %8, %10 : vector<256x32xf32>
    %cst_7 = arith.constant dense<0.000000e+00> : vector<256xf32>
    %12 = vector.multi_reduction <add>, %11, %cst_7 [1] : vector<256x32xf32> to vector<256xf32>
    %13 = vector.shape_cast %12 : vector<256xf32> to vector<256x1xf32>
    %c0_8 = arith.constant 0 : index
    %14 = memref.load %arg4[%c0_8] : memref<1xf32, #tpu.memory_space<smem>>
    %15 = vector.broadcast %14 : f32 to vector<256x1xf32>
    %16 = arith.addf %13, %15 : vector<256x1xf32>
    %c0_9 = arith.constant 0 : index
    %c0_10 = arith.constant 0 : index
    %17 = vector.load %arg5[%c0_9, %c0_10] : memref<256x1xf32, #tpu.memory_space<vmem>>, vector<256x1xf32>
    tpu.vector_store %arg5[%c0_9, %c0_10], %16 {strides = array<i32>} : memref<256x1xf32, #tpu.memory_space<vmem>>, vector<256x1xf32>,
    return
  }
  func.func @transform_0(%arg0: i32) -> (i32, i32) {
    %c0_i32 = arith.constant 0 : i32
    %c0_i32_0 = arith.constant 0 : i32
    return %arg0, %c0_i32 : i32, i32
  }
  func.func @transform_1(%arg0: i32) -> (i32, i32) {
    %c0_i32 = arith.constant 0 : i32
    %c0_i32_0 = arith.constant 0 : i32
    %c0_i32_1 = arith.constant 0 : i32
    return %c0_i32, %c0_i32_0 : i32, i32
  }
  func.func @transform_2(%arg0: i32) -> (i32, i32) {
    %c0_i32 = arith.constant 0 : i32
    %c0_i32_0 = arith.constant 0 : i32
    %c0_i32_1 = arith.constant 0 : i32
    return %c0_i32, %c0_i32_0 : i32, i32
  }
  func.func @transform_3(%arg0: i32) -> i32 {
    %c0_i32 = arith.constant 0 : i32
    %c0_i32_0 = arith.constant 0 : i32
    return %c0_i32 : i32
  }
  func.func @transform_4(%arg0: i32) -> (i32, i32) {
    %c0_i32 = arith.constant 0 : i32
    %c0_i32_0 = arith.constant 0 : i32
    return %arg0, %c0_i32 : i32, i32
  }
}

</mosaic_0001>

<bundles_post_ra>
// kernel: deep_neurd_forward.1
= control target key start
LH: loop header
LB: loop body
LE: loop exit
PB: predicated region body
PF: predicated region fallthrough
CT: control target
= control target key end

     0   :  { %s1805_s0 = inlined_call_operand.vmem [shape: f32[300,16], index: 0, kind: input, shape index: {}]   ;;  %s1806_s1 = inlined_call_operand.vmem [shape: bf16[16,32], index: 1, kind: input, shape index: {}]   ;;  %s1807_s2 = inlined_call_operand.vmem [shape: f32[2,32], index: 2, kind: input, shape index: {}]   ;;  %s1808_s3 = inlined_call_operand.<no memory space> [shape: f32[1], index: 3, kind: input, shape index: {}]   ;;  %s1809_s4 = inlined_call_operand.vmem [shape: f32[300,1], index: 4, kind: output, shape index: {}]  }
   0x1   :  { %9 = sst [smem:[#allocation2]] %s1808_s3 }
   0x2   :  { %s1369_s17 = smov 0   ;;  %s1371_s18 = smov 0  }
   0x3   :  { %s1373_s19 = smov 0  }
   0x4 LB: > { %s1382_s3 = sadd.s32 4294967295, %s1307_s19   ;;  %s1384_s20 = sadd.s32 1, %s1307_s19   ;;  %s1307_s19 = sphi %s1373_s19, %s1818_s19   ;;  %s1303_s18 = sphi %s1371_s18, %s1817_s18   ;;  %s1299_s17 = sphi %s1369_s17, %s1816_s17  }
   0x5   : > { %s108_s21 = ssub.s32 %s1307_s19, %s1384_s20  ;;  %s111_s22 = sadd.s32 1, %s1303_s18 }
   0x6   : > { %p109_p0 = scmp.eq.s32.totalorder %s108_s21, 0  ;;  %p121_p1 = scmp.ne.s32.totalorder %s1303_s18, %s1299_s17 }
   0x7   : > { %p122_p2 = scmp.eq.s32.totalorder %s1382_s3, 1  ;;  %p1068_p3 = scmp.ge.s32.totalorder %s1307_s19, 1 }
   0x8   : > { %s1392_s23 = scalar_select %p109_p0, %s1303_s18, %s111_s22  }
   0x9   : > { %p1394_p4 = por %p122_p2, %p121_p1  ;;  %p172_p5 = scmp.lt.s32.totalorder %s1307_s19, 3 }
   0xb   : > { %p173_p6 = pnand %p1068_p3, %p172_p5 }
   0xc   : > { %s1402_s27 = sshll.u32 (!%p173_p6), %s1382_s3, 5  ;;  %s658_s11 = sld [smem:[#allocation2]] (!%p173_p6) }
   0xd   : > { %176 = sbr.rel (%p173_p6) target bundleno = 476 (0x1dc), region = 36  ;;  %p206_p7 = scmp.lt.s32.totalorder (!%p173_p6), %s1402_s27, 37 }
   0xe   : > { %s198_s12 = sand.u32 (!%p173_p6), 1, %s1299_s17  }
   0xf   : > { %s1069_s13 = sshll.u32 (!%p173_p6), %s198_s12, 8 }
  0x10   : > { %s1570_s14 = scalar_lea.vmem (!%p173_p6), [#allocation3], %s1069_s13  }
  0x12   : > { %v1252_v0 = vld [vmem:[%s1806_s1] sm:$0xff]   ;;  %s207_s28 = scalar_select %p206_p7, %s1402_s27, 37  ;;  %vm282_vm0 = vcmask 130048   ;;  %vm561_vm1 = vcmask 261120   ;;  %vm692_vm2 = vcmask 7168  }
  0x13   : > { %1128 = vmatprep.subr.bf16.mxu0 %v1252_v0  ;;  %1162 = vmatprep.subr.bf16.mxu1 %v1252_v0  ;;  %v1462_v49 = vld [vmem:[%s1807_s2] ss:$0 sm:$0xff]  ;;  %v1469_v55 = vld [vmem:[%s1807_s2 + $0x1] ss:$0 sm:$0xff]  ;;  %s733_s15 = ssub.s32 (%p1394_p4), 38, %s1402_s27  ;;  %s1108_s16 = sshll.u32 (%p1394_p4), %s1382_s3, 8 }
  0x14   : > { %1129 = vmatpush3.bf16.msra.mxu0 %v1252_v0  ;;  %1163 = vmatpush3.bf16.msra.mxu1 %v1252_v0  ;;  %s1071_s29 = sshll.u32 %s207_s28, 3  ;;  %p734_p8 = scmp.lt.s32.totalorder (%p1394_p4), %s733_s15, 32 }
  0x15   : > { %s1409_s6 = scalar_lea.vmem %s1805_s0, %s1071_s29  ;;  %s1673_s21 = scalar_lea.vmem (%p1394_p4), %s1809_s4, %s1108_s16  }
  0x16   : > { %v221_v1 = vld [vmem:[%s1409_s6] sm:$0xff]  ;;  %v222_v2 = vld [vmem:[%s1409_s6 + $0x8] sm:$0xff]  ;;  %v223_v6 = vld [vmem:[%s1409_s6 + $0x10] sm:$0xff] }
  0x17   : > { %v237_v3 = vld [vmem:[%s1409_s6 + $0x80] sm:$0xff]  ;;  %v253_v4 = vpack.c.bf16 %v222_v2, %v221_v1  ;;  %v238_v5 = vld [vmem:[%s1409_s6 + $0x88] sm:$0xff]  ;;  %v224_v7 = vld [vmem:[%s1409_s6 + $0x18] sm:$0xff] }
  0x18   : > { %v261_v8 = vpack.c.bf16 %v238_v5, %v237_v3  ;;  %v254_v9 = vpack.c.bf16 %v224_v7, %v223_v6  ;;  %v239_v10 = vld [vmem:[%s1409_s6 + $0x90] sm:$0xff]  ;;  %v240_v11 = vld [vmem:[%s1409_s6 + $0x98] sm:$0xff]  ;;  %v225_v12 = vld [vmem:[%s1409_s6 + $0x20] sm:$0xff] }
  0x19   : > { %1130 = vmatprep.mubr.msk.bf16.mxu0 %vm282_vm0, %v253_v4  ;;  %v262_v13 = vpack.c.bf16 %v240_v11, %v239_v10  ;;  %v226_v14 = vld [vmem:[%s1409_s6 + $0x28] sm:$0xff]  ;;  %v241_v16 = vld [vmem:[%s1409_s6 + $0xa0] sm:$0xff]  ;;  %v227_v18 = vld [vmem:[%s1409_s6 + $0x30] sm:$0xff] }
  0x1a   : > { %1146 = vmatprep.mubr.msk.bf16.mxu1 %vm282_vm0, %v261_v8  ;;  %1131 = vmatmul.mubr.msk.bf16.vlgmr.msra.gmra.mxu0 %vm282_vm0, %v254_v9  ;;  %v255_v15 = vpack.c.bf16 %v226_v14, %v225_v12  ;;  %v242_v17 = vld [vmem:[%s1409_s6 + $0xa8] sm:$0xff]  ;;  %v228_v19 = vld [vmem:[%s1409_s6 + $0x38] sm:$0xff]  ;;  %v243_v21 = vld [vmem:[%s1409_s6 + $0xb0] sm:$0xff] }
  0x1b   : > { %1147 = vmatmul.mubr.msk.bf16.vlgmr.msra.gmra.mxu1 %vm282_vm0, %v262_v13  ;;  %v263_v20 = vpack.c.bf16 %v242_v17, %v241_v16  ;;  %v244_v22 = vld [vmem:[%s1409_s6 + $0xb8] sm:$0xff]  ;;  %v229_v23 = vld [vmem:[%s1409_s6 + $0x40] sm:$0xff]  ;;  %v230_v24 = vld [vmem:[%s1409_s6 + $0x48] sm:$0xff]  ;;  %v256_v27 = vpack.c.bf16 %v228_v19, %v227_v18 }
  0x1c   : > { %1134 = vmatprep.mubr.msk.bf16.mxu0 %vm282_vm0, %v255_v15  ;;  %v245_v25 = vld [vmem:[%s1409_s6 + $0xc0] sm:$0xff]  ;;  %v246_v26 = vld [vmem:[%s1409_s6 + $0xc8] sm:$0xff]  ;;  %v264_v28 = vpack.c.bf16 %v244_v22, %v243_v21  ;;  %v257_v29 = vpack.c.bf16 %v230_v24, %v229_v23  ;;  %v231_v31 = vld [vmem:[%s1409_s6 + $0x50] sm:$0xff] }
  0x1d   : > { %1150 = vmatprep.mubr.msk.bf16.mxu1 %vm282_vm0, %v263_v20  ;;  %v265_v30 = vpack.c.bf16 %v246_v26, %v245_v25  ;;  %v232_v32 = vld [vmem:[%s1409_s6 + $0x58] sm:$0xff]  ;;  %v247_v33 = vld [vmem:[%s1409_s6 + $0xd0] sm:$0xff]  ;;  %v233_v35 = vld [vmem:[%s1409_s6 + $0x60] sm:$0xff] }
  0x1e   : > { %v248_v34 = vld [vmem:[%s1409_s6 + $0xd8] sm:$0xff]  ;;  %v234_v36 = vld [vmem:[%s1409_s6 + $0x68] sm:$0xff]  ;;  %v249_v37 = vld [vmem:[%s1409_s6 + $0xe0] sm:$0xff]  ;;  %v258_v39 = vpack.c.bf16 %v232_v32, %v231_v31 }
  0x1f   : > { %v250_v38 = vld [vmem:[%s1409_s6 + $0xe8] sm:$0xff]  ;;  %v266_v40 = vpack.c.bf16 %v248_v34, %v247_v33  ;;  %v259_v41 = vpack.c.bf16 %v234_v36, %v233_v35  ;;  %v235_v43 = vld [vmem:[%s1409_s6 + $0x70] sm:$0xff]  ;;  %v236_v44 = vld [vmem:[%s1409_s6 + $0x78] sm:$0xff] }
  0x20   : > { %v267_v42 = vpack.c.bf16 %v250_v38, %v249_v37  ;;  %v251_v45 = vld [vmem:[%s1409_s6 + $0xf0] sm:$0xff]  ;;  %v252_v46 = vld [vmem:[%s1409_s6 + $0xf8] sm:$0xff]  ;;  %v260_v47 = vpack.c.bf16 %v236_v44, %v235_v43 }
  0x21   : > { %v268_v48 = vpack.c.bf16 %v252_v46, %v251_v45 }
  0x22   : > { %1135 = vmatmul.mubr.msk.bf16.gmra.mxu0 %vm282_vm0, %v256_v27 }
  0x23   : > { %1151 = vmatmul.mubr.msk.bf16.gmra.mxu1 %vm282_vm0, %v264_v28  ;;  %1138 = vmatprep.mubr.msk.bf16.mxu0 %vm282_vm0, %v257_v29 }
  0x24   : > { %1154 = vmatprep.mubr.msk.bf16.mxu1 %vm282_vm0, %v265_v30 }
  0x2a   : > { %1139 = vmatmul.mubr.msk.bf16.gmra.mxu0 %vm282_vm0, %v258_v39 }
  0x2b   : > { %1155 = vmatmul.mubr.msk.bf16.gmra.mxu1 %vm282_vm0, %v266_v40  ;;  %1142 = vmatprep.mubr.msk.bf16.mxu0 %vm282_vm0, %v259_v41 }
  0x2c   : > { %1158 = vmatprep.mubr.msk.bf16.mxu1 %vm282_vm0, %v267_v42 }
  0x32   : > { %1143 = vmatmul.mubr.msk.bf16.gmra.mxu0 %vm282_vm0, %v260_v47 }
  0x33   : > { %1159 = vmatmul.mubr.msk.bf16.gmra.mxu1 %vm282_vm0, %v268_v48 }
  0xda   : > { %v1132_v50 = vpop.f32.mrf.mxu0 }
  0xdb   : > { %v374_v51 = vadd.f32 %v1132_v50, %v1462_v49  ;;  %v1148_v52 = vpop.f32.mrf.mxu1 }
  0xdc   : > { %v438_v53 = vadd.f32 %v1148_v52, %v1462_v49  ;;  %v365_v54 = vpop.f32.mrf.mxu0 }
  0xdd   : > { %v494_v56 = vmax.f32 %v374_v51, 0.0  ;;  %v366_v57 = vadd.f32 %v1462_v49, %v365_v54  ;;  %v429_v58 = vpop.f32.mrf.mxu1 }
  0xde   : > { %v510_v59 = vmax.f32 %v438_v53, 0.0  ;;  %v430_v60 = vadd.f32 %v1462_v49, %v429_v58  ;;  %v1133_v61 = vpop.f32.mrf.mxu0 }
  0xdf   : > { %v492_v62 = vmax.f32 %v366_v57, 0.0  ;;  %v377_v63 = vadd.f32 %v1133_v61, %v1462_v49  ;;  %v1149_v0 = vpop.f32.mrf.mxu1  ;;  %v531_v1 = vmul.f32 %v1469_v55, %v494_v56 }
  0xe0   : > { %v441_v2 = vadd.f32 %v1149_v0, %v1462_v49  ;;  %v368_v3 = vpop.f32.mrf.mxu0  ;;  %v547_v4 = vmul.f32 %v1469_v55, %v510_v59  ;;  %v508_v5 = vmax.f32 %v430_v60, 0.0 }
  0xe1   : > { %v495_v6 = vmax.f32 %v377_v63, 0.0  ;;  %v369_v7 = vadd.f32 %v1462_v49, %v368_v3  ;;  %v432_v8 = vpop.f32.mrf.mxu1  ;;  %v568_v9 = vsel %vm561_vm1, %v531_v1, 0.0  ;;  %v529_v14 = vmul.f32 %v1469_v55, %v492_v62 }
  0xe2   : > { %v511_v10 = vmax.f32 %v441_v2, 0.0  ;;  %v433_v11 = vadd.f32 %v1462_v49, %v432_v8  ;;  %v616_v12 = vsel %vm561_vm1, %v547_v4, 0.0  ;;  %569 = vadd.xlane.f32.xlu1 %v568_v9  ;;  %v1136_v13 = vpop.f32.mrf.mxu0  ;;  %v545_v26 = vmul.f32 %v1469_v55, %v508_v5 }
  0xe3   : > { %617 = vadd.xlane.f32.xlu0 %v616_v12  ;;  %v1152_v15 = vpop.f32.mrf.mxu1  ;;  %v532_v16 = vmul.f32 %v1469_v55, %v495_v6  ;;  %v493_v22 = vmax.f32 %v369_v7, 0.0  ;;  %v390_v23 = vadd.f32 %v1136_v13, %v1462_v49  ;;  %v562_v25 = vsel %vm561_vm1, %v529_v14, 0.0 }
  0xe4   : > { %v381_v17 = vpop.f32.mrf.mxu0  ;;  %v509_v18 = vmax.f32 %v433_v11, 0.0  ;;  %v548_v21 = vmul.f32 %v1469_v55, %v511_v10  ;;  %v454_v34 = vadd.f32 %v1152_v15, %v1462_v49  ;;  %v610_v36 = vsel %vm561_vm1, %v545_v26, 0.0 }
  0xe5   : > { %v445_v19 = vpop.f32.mrf.mxu1  ;;  %v571_v20 = vsel %vm561_vm1, %v532_v16, 0.0  ;;  %v498_v33 = vmax.f32 %v390_v23, 0.0  ;;  %v530_v37 = vmul.f32 %v1469_v55, %v493_v22  ;;  %v382_v43 = vadd.f32 %v1462_v49, %v381_v17 }
  0xe6   : > { %572 = vadd.xlane.f32.xlu1 %v571_v20  ;;  %v1137_v24 = vpop.f32.mrf.mxu0  ;;  %v619_v31 = vsel %vm561_vm1, %v548_v21, 0.0  ;;  %v546_v32 = vmul.f32 %v1469_v55, %v509_v18  ;;  %v514_v44 = vmax.f32 %v454_v34, 0.0  ;;  %v446_v57 = vadd.f32 %v1462_v49, %v445_v19 }
  0xe7   : > { %v393_v27 = vadd.f32 %v1137_v24, %v1462_v49  ;;  %563 = vadd.xlane.f32.xlu0 %v562_v25  ;;  %v1153_v28 = vpop.f32.mrf.mxu1  ;;  %v565_v46 = vsel %vm561_vm1, %v530_v37, 0.0  ;;  %v535_v47 = vmul.f32 %v1469_v55, %v498_v33  ;;  %v496_v56 = vmax.f32 %v382_v43, 0.0 }
  0xe8   : > { %v457_v30 = vadd.f32 %v1153_v28, %v1462_v49  ;;  %v384_v35 = vpop.f32.mrf.mxu0  ;;  %v613_v41 = vsel %vm561_vm1, %v546_v32, 0.0  ;;  %v551_v59 = vmul.f32 %v1469_v55, %v514_v44  ;;  %v512_v2 = vmax.f32 %v446_v57, 0.0 }
  0xe9   : > { %v499_v29 = vmax.f32 %v393_v27, 0.0  ;;  %v385_v39 = vadd.f32 %v1462_v49, %v384_v35  ;;  %v448_v45 = vpop.f32.mrf.mxu1  ;;  %v580_v58 = vsel %vm561_vm1, %v535_v47, 0.0  ;;  %v533_v5 = vmul.f32 %v1469_v55, %v496_v56 }
  0xea   : > { %620 = vadd.xlane.f32.xlu1 %v619_v31  ;;  %v1140_v38 = vpop.f32.mrf.mxu0  ;;  %v515_v40 = vmax.f32 %v457_v30, 0.0  ;;  %v449_v52 = vadd.f32 %v1462_v49, %v448_v45  ;;  %v628_v4 = vsel %vm561_vm1, %v551_v59, 0.0  ;;  %v549_v15 = vmul.f32 %v1469_v55, %v512_v2 }
  0xeb   : > { %611 = vadd.xlane.f32.xlu0 %v610_v36  ;;  %v536_v42 = vmul.f32 %v1469_v55, %v499_v29  ;;  %v1156_v50 = vpop.f32.mrf.mxu1  ;;  %v497_v51 = vmax.f32 %v385_v39, 0.0  ;;  %v406_v3 = vadd.f32 %v1140_v38, %v1462_v49  ;;  %v574_v14 = vsel %vm561_vm1, %v533_v5, 0.0 }
  0xec   : > { %v397_v48 = vpop.f32.mrf.mxu0  ;;  %v552_v54 = vmul.f32 %v1469_v55, %v515_v40  ;;  %v513_v62 = vmax.f32 %v449_v52, 0.0  ;;  %v470_v13 = vadd.f32 %v1156_v50, %v1462_v49  ;;  %v622_v24 = vsel %vm561_vm1, %v549_v15, 0.0 }
  0xed   : > { %v583_v53 = vsel %vm561_vm1, %v536_v42, 0.0  ;;  %v461_v61 = vpop.f32.mrf.mxu1  ;;  %v534_v1 = vmul.f32 %v1469_v55, %v497_v51  ;;  %v502_v12 = vmax.f32 %v406_v3, 0.0  ;;  %v398_v22 = vadd.f32 %v1462_v49, %v397_v48 }
  0xee   : > { %614 = vadd.xlane.f32.xlu1 %v613_v41  ;;  %v1141_v60 = vpop.f32.mrf.mxu0  ;;  %v631_v0 = vsel %vm561_vm1, %v552_v54, 0.0  ;;  %v550_v11 = vmul.f32 %v1469_v55, %v513_v62  ;;  %v518_v23 = vmax.f32 %v470_v13, 0.0  ;;  %v462_v33 = vadd.f32 %v1462_v49, %v461_v61 }
  0xef   : > { %566 = vadd.xlane.f32.xlu0 %v565_v46  ;;  %v409_v63 = vadd.f32 %v1141_v60, %v1462_v49  ;;  %v1157_v7 = vpop.f32.mrf.mxu1  ;;  %v577_v10 = vsel %vm561_vm1, %v534_v1, 0.0  ;;  %v539_v26 = vmul.f32 %v1469_v55, %v502_v12  ;;  %v500_v32 = vmax.f32 %v398_v22, 0.0 }
  0xf0   : > { %v400_v6 = vpop.f32.mrf.mxu0  ;;  %v473_v9 = vadd.f32 %v1157_v7, %v1462_v49  ;;  %v625_v20 = vsel %vm561_vm1, %v550_v11, 0.0  ;;  %v555_v36 = vmul.f32 %v1469_v55, %v518_v23  ;;  %v516_v42 = vmax.f32 %v462_v33, 0.0 }
  0xf1   : > { %v503_v8 = vmax.f32 %v409_v63, 0.0  ;;  %v464_v17 = vpop.f32.mrf.mxu1  ;;  %v401_v18 = vadd.f32 %v1462_v49, %v400_v6  ;;  %v592_v34 = vsel %vm561_vm1, %v539_v26, 0.0  ;;  %v537_v47 = vmul.f32 %v1469_v55, %v500_v32 }
  0xf2   : > { %584 = vadd.xlane.f32.xlu1 %v583_v53  ;;  %v1144_v16 = vpop.f32.mrf.mxu0  ;;  %v519_v19 = vmax.f32 %v473_v9, 0.0  ;;  %v465_v29 = vadd.f32 %v1462_v49, %v464_v17  ;;  %v640_v45 = vsel %vm561_vm1, %v555_v36, 0.0  ;;  %v1566_v22 = vstv %s658_s11 }
  0xf3   : > { %581 = vadd.xlane.f32.xlu0 %v580_v58  ;;  %v540_v21 = vmul.f32 %v1469_v55, %v503_v8  ;;  %v1160_v27 = vpop.f32.mrf.mxu1  ;;  %v501_v28 = vmax.f32 %v401_v18, 0.0  ;;  %v422_v43 = vadd.f32 %v1144_v16, %v1462_v49  ;;  %v586_v56 = vsel %vm561_vm1, %v537_v47, 0.0 }
  0xf4   : > { %v413_v25 = vpop.f32.mrf.mxu0  ;;  %v556_v31 = vmul.f32 %v1469_v55, %v519_v19  ;;  %v517_v38 = vmax.f32 %v465_v29, 0.0  ;;  %v553_v58 = vmul.f32 %v1469_v55, %v516_v42  ;;  %v486_v7 = vadd.f32 %v1160_v27, %v1462_v49 }
  0xf5   : > { %v595_v30 = vsel %vm561_vm1, %v540_v21, 0.0  ;;  %v477_v37 = vpop.f32.mrf.mxu1  ;;  %v538_v41 = vmul.f32 %v1469_v55, %v501_v28  ;;  %v506_v53 = vmax.f32 %v422_v43, 0.0  ;;  %v414_v54 = vadd.f32 %v1462_v49, %v413_v25 }
  0xf6   : > { %632 = vadd.xlane.f32.xlu1 %v631_v0  ;;  %v1145_v35 = vpop.f32.mrf.mxu0  ;;  %v643_v40 = vsel %vm561_vm1, %v556_v31, 0.0  ;;  %v554_v52 = vmul.f32 %v1469_v55, %v517_v38  ;;  %v478_v0 = vadd.f32 %v1462_v49, %v477_v37  ;;  %v634_v1 = vsel %vm561_vm1, %v553_v58, 0.0 }
  0xf7   : > { %629 = vadd.xlane.f32.xlu0 %v628_v4  ;;  %v425_v39 = vadd.f32 %v1145_v35, %v1462_v49  ;;  %v1161_v46 = vpop.f32.mrf.mxu1  ;;  %v589_v51 = vsel %vm561_vm1, %v538_v41, 0.0  ;;  %v504_v63 = vmax.f32 %v414_v54, 0.0  ;;  %v543_v2 = vmul.f32 %v1469_v55, %v506_v53 }
  0xf8   : > { %v416_v44 = vpop.f32.mrf.mxu0  ;;  %v637_v61 = vsel %vm561_vm1, %v554_v52, 0.0  ;;  %v489_v3 = vadd.f32 %v1161_v46, %v1462_v49  ;;  %v520_v8 = vmax.f32 %v478_v0, 0.0 }
  0xf9   : > { %v507_v48 = vmax.f32 %v425_v39, 0.0  ;;  %v417_v50 = vadd.f32 %v1462_v49, %v416_v44  ;;  %v480_v57 = vpop.f32.mrf.mxu1  ;;  %v604_v9 = vsel %vm561_vm1, %v543_v2, 0.0 }
  0xfa   : > { %578 = vadd.xlane.f32.xlu1 %v577_v10  ;;  %v481_v60 = vadd.f32 %v1462_v49, %v480_v57  ;;  %v541_v10 = vmul.f32 %v1469_v55, %v504_v63  ;;  %v523_v11 = vmax.f32 %v489_v3, 0.0  ;;  %v557_v16 = vmul.f32 %v1469_v55, %v520_v8 }
  0xfb   : > { %575 = vadd.xlane.f32.xlu0 %v574_v14  ;;  %v505_v59 = vmax.f32 %v417_v50, 0.0  ;;  %v544_v62 = vmul.f32 %v1469_v55, %v507_v48  ;;  %v522_v14 = vmax.f32 %v486_v7, 0.0 }
  0xfc   : > { %v521_v4 = vmax.f32 %v481_v60, 0.0  ;;  %v598_v15 = vsel %vm561_vm1, %v541_v10, 0.0  ;;  %v560_v17 = vmul.f32 %v1469_v55, %v523_v11  ;;  %v646_v18 = vsel %vm561_vm1, %v557_v16, 0.0 }
  0xfd   : > { %v607_v5 = vsel %vm561_vm1, %v544_v62, 0.0  ;;  %v542_v6 = vmul.f32 %v1469_v55, %v505_v59  ;;  %v559_v19 = vmul.f32 %v1469_v55, %v522_v14 }
  0xfe   : > { %626 = vadd.xlane.f32.xlu1 %v625_v20  ;;  %v558_v13 = vmul.f32 %v1469_v55, %v521_v4  ;;  %v655_v20 = vsel %vm561_vm1, %v560_v17, 0.0 }
  0xff   : > { %623 = vadd.xlane.f32.xlu0 %v622_v24  ;;  %v601_v12 = vsel %vm561_vm1, %v542_v6, 0.0  ;;  %v652_v21 = vsel %vm561_vm1, %v559_v19, 0.0 }
 0x100   : > { %v649_v49 = vsel %vm561_vm1, %v558_v13, 0.0 }
 0x102   : > { %596 = vadd.xlane.f32.xlu1 %v595_v30 }
 0x103   : > { %593 = vadd.xlane.f32.xlu0 %v592_v34 }
 0x106   : > { %644 = vadd.xlane.f32.xlu1 %v643_v40 }
 0x107   : > { %641 = vadd.xlane.f32.xlu0 %v640_v45 }
 0x10a   : > { %590 = vadd.xlane.f32.xlu1 %v589_v51 }
 0x10b   : > { %587 = vadd.xlane.f32.xlu0 %v586_v56 }
 0x10e   : > { %638 = vadd.xlane.f32.xlu1 %v637_v61 }
 0x10f   : > { %635 = vadd.xlane.f32.xlu0 %v634_v1 }
 0x112   : > { %608 = vadd.xlane.f32.xlu1 %v607_v5 }
 0x113   : > { %605 = vadd.xlane.f32.xlu0 %v604_v9 }
 0x116   : > { %602 = vadd.xlane.f32.xlu1 %v601_v12 }
 0x117   : > { %599 = vadd.xlane.f32.xlu0 %v598_v15 }
 0x11a   : > { %650 = vadd.xlane.f32.xlu1 %v649_v49 }
 0x11b   : > { %647 = vadd.xlane.f32.xlu0 %v646_v18 }
 0x11e   : > { %656 = vadd.xlane.f32.xlu1 %v655_v20 }
 0x11f   : > { %653 = vadd.xlane.f32.xlu0 %v652_v21 }
 0x16b   : > { %v570_v23 = vpop.xlane.xlu1 %569 }
 0x16c   : > { %v618_v24 = vpop.xlane.xlu0 %617  ;;  %v662_v25 = vadd.f32 %v1566_v22, %v570_v23 }
 0x16d   : > { %v678_v26 = vadd.f32 %v1566_v22, %v618_v24 }
 0x16e   : > { %695 = vst.msk [vmem:[%s1570_s14 + $0x10] sm:$0xff] %vm692_vm2, %v662_v25 }
 0x16f   : > { %711 = vst.msk [vmem:[%s1570_s14 + $0x90] sm:$0xff] %vm692_vm2, %v678_v26  ;;  %v573_v55 = vpop.xlane.xlu1 %572 }
 0x170   : > { %v663_v27 = vadd.f32 %v1566_v22, %v573_v55  ;;  %v564_v28 = vpop.xlane.xlu0 %563 }
 0x171   : > { %v660_v29 = vadd.f32 %v1566_v22, %v564_v28 }
 0x172   : > { %696 = vst.msk [vmem:[%s1570_s14 + $0x18] sm:$0xff] %vm692_vm2, %v663_v27 }
 0x173   : > { %693 = vst.msk [vmem:[%s1570_s14] sm:$0xff] %vm692_vm2, %v660_v29  ;;  %v621_v30 = vpop.xlane.xlu1 %620 }
 0x174   : > { %v679_v31 = vadd.f32 %v1566_v22, %v621_v30  ;;  %v612_v32 = vpop.xlane.xlu0 %611 }
 0x175   : > { %v676_v33 = vadd.f32 %v1566_v22, %v612_v32 }
 0x176   : > { %712 = vst.msk [vmem:[%s1570_s14 + $0x98] sm:$0xff] %vm692_vm2, %v679_v31 }
 0x177   : > { %709 = vst.msk [vmem:[%s1570_s14 + $0x80] sm:$0xff] %vm692_vm2, %v676_v33  ;;  %v615_v34 = vpop.xlane.xlu1 %614 }
 0x178   : > { %v677_v35 = vadd.f32 %v1566_v22, %v615_v34  ;;  %v567_v36 = vpop.xlane.xlu0 %566 }
 0x179   : > { %v661_v37 = vadd.f32 %v1566_v22, %v567_v36 }
 0x17a   : > { %710 = vst.msk [vmem:[%s1570_s14 + $0x88] sm:$0xff] %vm692_vm2, %v677_v35 }
 0x17b   : > { %694 = vst.msk [vmem:[%s1570_s14 + $0x8] sm:$0xff] %vm692_vm2, %v661_v37  ;;  %v585_v38 = vpop.xlane.xlu1 %584 }
 0x17c   : > { %v667_v39 = vadd.f32 %v1566_v22, %v585_v38  ;;  %v582_v40 = vpop.xlane.xlu0 %581 }
 0x17d   : > { %v666_v41 = vadd.f32 %v1566_v22, %v582_v40 }
 0x17e   : > { %700 = vst.msk [vmem:[%s1570_s14 + $0x38] sm:$0xff] %vm692_vm2, %v667_v39 }
 0x17f   : > { %699 = vst.msk [vmem:[%s1570_s14 + $0x30] sm:$0xff] %vm692_vm2, %v666_v41  ;;  %v633_v42 = vpop.xlane.xlu1 %632 }
 0x180   : > { %v683_v43 = vadd.f32 %v1566_v22, %v633_v42  ;;  %v630_v44 = vpop.xlane.xlu0 %629 }
 0x181   : > { %v682_v45 = vadd.f32 %v1566_v22, %v630_v44 }
 0x182   : > { %716 = vst.msk [vmem:[%s1570_s14 + $0xb8] sm:$0xff] %vm692_vm2, %v683_v43 }
 0x183   : > { %715 = vst.msk [vmem:[%s1570_s14 + $0xb0] sm:$0xff] %vm692_vm2, %v682_v45  ;;  %v579_v46 = vpop.xlane.xlu1 %578 }
 0x184   : > { %v665_v47 = vadd.f32 %v1566_v22, %v579_v46  ;;  %v576_v48 = vpop.xlane.xlu0 %575 }
 0x185   : > { %v664_v50 = vadd.f32 %v1566_v22, %v576_v48 }
 0x186   : > { %698 = vst.msk [vmem:[%s1570_s14 + $0x28] sm:$0xff] %vm692_vm2, %v665_v47 }
 0x187   : > { %697 = vst.msk [vmem:[%s1570_s14 + $0x20] sm:$0xff] %vm692_vm2, %v664_v50  ;;  %v627_v51 = vpop.xlane.xlu1 %626 }
 0x188   : > { %v681_v52 = vadd.f32 %v1566_v22, %v627_v51  ;;  %v624_v53 = vpop.xlane.xlu0 %623 }
 0x189   : > { %v680_v54 = vadd.f32 %v1566_v22, %v624_v53 }
 0x18a   : > { %714 = vst.msk [vmem:[%s1570_s14 + $0xa8] sm:$0xff] %vm692_vm2, %v681_v52 }
 0x18b   : > { %713 = vst.msk [vmem:[%s1570_s14 + $0xa0] sm:$0xff] %vm692_vm2, %v680_v54  ;;  %v597_v56 = vpop.xlane.xlu1 %596 }
 0x18c   : > { %v671_v57 = vadd.f32 %v1566_v22, %v597_v56  ;;  %v594_v58 = vpop.xlane.xlu0 %593 }
 0x18d   : > { %v670_v59 = vadd.f32 %v1566_v22, %v594_v58 }
 0x18e   : > { %704 = vst.msk [vmem:[%s1570_s14 + $0x58] sm:$0xff] %vm692_vm2, %v671_v57 }
 0x18f   : > { %703 = vst.msk [vmem:[%s1570_s14 + $0x50] sm:$0xff] %vm692_vm2, %v670_v59  ;;  %v645_v60 = vpop.xlane.xlu1 %644 }
 0x190   : > { %v687_v61 = vadd.f32 %v1566_v22, %v645_v60  ;;  %v642_v62 = vpop.xlane.xlu0 %641 }
 0x191   : > { %v686_v63 = vadd.f32 %v1566_v22, %v642_v62 }
 0x192   : > { %720 = vst.msk [vmem:[%s1570_s14 + $0xd8] sm:$0xff] %vm692_vm2, %v687_v61 }
 0x193   : > { %719 = vst.msk [vmem:[%s1570_s14 + $0xd0] sm:$0xff] %vm692_vm2, %v686_v63  ;;  %v591_v0 = vpop.xlane.xlu1 %590 }
 0x194   : > { %v669_v1 = vadd.f32 %v1566_v22, %v591_v0  ;;  %v588_v2 = vpop.xlane.xlu0 %587 }
 0x195   : > { %v668_v3 = vadd.f32 %v1566_v22, %v588_v2 }
 0x196   : > { %702 = vst.msk [vmem:[%s1570_s14 + $0x48] sm:$0xff] %vm692_vm2, %v669_v1 }
 0x197   : > { %701 = vst.msk [vmem:[%s1570_s14 + $0x40] sm:$0xff] %vm692_vm2, %v668_v3  ;;  %v639_v4 = vpop.xlane.xlu1 %638 }
 0x198   : > { %v685_v5 = vadd.f32 %v1566_v22, %v639_v4  ;;  %v636_v6 = vpop.xlane.xlu0 %635 }
 0x199   : > { %v684_v7 = vadd.f32 %v1566_v22, %v636_v6 }
 0x19a   : > { %718 = vst.msk [vmem:[%s1570_s14 + $0xc8] sm:$0xff] %vm692_vm2, %v685_v5 }
 0x19b   : > { %717 = vst.msk [vmem:[%s1570_s14 + $0xc0] sm:$0xff] %vm692_vm2, %v684_v7  ;;  %v609_v8 = vpop.xlane.xlu1 %608 }
 0x19c   : > { %v675_v9 = vadd.f32 %v1566_v22, %v609_v8  ;;  %v606_v10 = vpop.xlane.xlu0 %605 }
 0x19d   : > { %v674_v11 = vadd.f32 %v1566_v22, %v606_v10 }
 0x19e   : > { %708 = vst.msk [vmem:[%s1570_s14 + $0x78] sm:$0xff] %vm692_vm2, %v675_v9 }
 0x19f   : > { %707 = vst.msk [vmem:[%s1570_s14 + $0x70] sm:$0xff] %vm692_vm2, %v674_v11  ;;  %v603_v12 = vpop.xlane.xlu1 %602 }
 0x1a0   : > { %v673_v13 = vadd.f32 %v1566_v22, %v603_v12  ;;  %v600_v14 = vpop.xlane.xlu0 %599 }
 0x1a1   : > { %v672_v15 = vadd.f32 %v1566_v22, %v600_v14 }
 0x1a2   : > { %706 = vst.msk [vmem:[%s1570_s14 + $0x68] sm:$0xff] %vm692_vm2, %v673_v13 }
 0x1a3   : > { %705 = vst.msk [vmem:[%s1570_s14 + $0x60] sm:$0xff] %vm692_vm2, %v672_v15  ;;  %v651_v16 = vpop.xlane.xlu1 %650 }
 0x1a4   : > { %v689_v49 = vadd.f32 %v1566_v22, %v651_v16  ;;  %v648_v17 = vpop.xlane.xlu0 %647 }
 0x1a5   : > { %v688_v18 = vadd.f32 %v1566_v22, %v648_v17 }
 0x1a6   : > { %722 = vst.msk [vmem:[%s1570_s14 + $0xe8] sm:$0xff] %vm692_vm2, %v689_v49 }
 0x1a7   : > { %721 = vst.msk [vmem:[%s1570_s14 + $0xe0] sm:$0xff] %vm692_vm2, %v688_v18  ;;  %v657_v19 = vpop.xlane.xlu1 %656  ;;  %731 = sbr.rel (!%p1394_p4) target bundleno = 476 (0x1dc), region = 40 }
 0x1a8   : > { %v691_v20 = vadd.f32 %v1566_v22, %v657_v19  ;;  %v654_v21 = vpop.xlane.xlu0 %653 }
 0x1a9   : > { %v690_v23 = vadd.f32 %v1566_v22, %v654_v21 }
 0x1aa   : > { %724 = vst.msk [vmem:[%s1570_s14 + $0xf8] sm:$0xff] %vm692_vm2, %v691_v20 }
 0x1ab   : > { %723 = vst.msk [vmem:[%s1570_s14 + $0xf0] sm:$0xff] %vm692_vm2, %v690_v23 }
 0x1ac   : > { %s1820_s15 = smov (!%p734_p8, %s733_s15), 32 }
 0x1ad   : > { %s1093_s22 = sshll.u32 %s1820_s15, 7 }
 0x1ae   : > { %p1096_p9 = scmp.eq.s32.totalorder %s1093_s22, 0 }
 0x1af   : > { %s1679_s25 = sshrl.u32 (!%p1096_p9), %s1820_s15, 5 }
 0x1b0   : > { %742 = sbr.rel (%p1096_p9) target bundleno = 476 (0x1dc), region = 44  ;;  %p1097_p10 = scmp.le.s32.totalorder (!%p1096_p9), %s1679_s25, 0 }
 0x1b5   : > { %1021 = sbr.rel (%p1097_p10) target bundleno = 459 (0x1cb), region = 120  ;;  %s1811_s3 = smov (!%p1097_p10), %s1673_s21 }
 0x1b6   : > { %s1812_s24 = smov (!%p1097_p10), %s1570_s14  ;;  %s1688_s26 = smov (!%p1097_p10), 0  }
 0x1b7   : > { %s1690_s27 = smov (!%p1097_p10), 0  }
 0x1ba LB: >> { %v867_v22 = vld [vmem:[%s1315_s24] sm:$0xff]  ;;  %v869_v24 = vld [vmem:[%s1315_s24 + $0x8] sm:$0xff]  ;;  %v871_v25 = vld [vmem:[%s1315_s24 + $0x10] sm:$0xff]  ;;  %s931_s28 = sadd.s32 1, %s1319_s26  ;;  %s861_s27 = sadd.s32 1, %s1323_s27   ;;  %s1323_s27 = sphi %s1690_s27, %s861_s27   ;;  %s1319_s26 = sphi %s1688_s26, %s1815_s26   ;;  %s1315_s24 = sphi %s1812_s24, %s1814_s24   ;;  %s1311_s3 = sphi %s1811_s3, %s1813_s3  }
 0x1bb   : >> { %868 = vst [vmem:[%s1311_s3] sm:$0xff] %v867_v22  ;;  %870 = vst [vmem:[%s1311_s3 + $0x8] sm:$0xff] %v869_v24  ;;  %v873_v26 = vld [vmem:[%s1315_s24 + $0x18] sm:$0xff]  ;;  %v875_v55 = vld [vmem:[%s1315_s24 + $0x20] sm:$0xff]  ;;  %p932_p11 = scmp.ge.s32.totalorder %s931_s28, %s1679_s25  ;;  %p860_p12 = scmp.ge.s32.totalorder %s861_s27, %s1679_s25 }
 0x1bc   : >> { %872 = vst [vmem:[%s1311_s3 + $0x10] sm:$0xff] %v871_v25  ;;  %v877_v27 = vld [vmem:[%s1315_s24 + $0x28] sm:$0xff]  ;;  %874 = vst [vmem:[%s1311_s3 + $0x18] sm:$0xff] %v873_v26  ;;  %v879_v28 = vld [vmem:[%s1315_s24 + $0x30] sm:$0xff] }
 0x1bd   : >> { %876 = vst [vmem:[%s1311_s3 + $0x20] sm:$0xff] %v875_v55  ;;  %878 = vst [vmem:[%s1311_s3 + $0x28] sm:$0xff] %v877_v27  ;;  %v881_v29 = vld [vmem:[%s1315_s24 + $0x38] sm:$0xff]  ;;  %v883_v30 = vld [vmem:[%s1315_s24 + $0x40] sm:$0xff]  ;;  %s1822_s28 = smov (%p932_p11, %s931_s28), 0 }
 0x1be   : >> { %880 = vst [vmem:[%s1311_s3 + $0x30] sm:$0xff] %v879_v28  ;;  %882 = vst [vmem:[%s1311_s3 + $0x38] sm:$0xff] %v881_v29  ;;  %v885_v31 = vld [vmem:[%s1315_s24 + $0x48] sm:$0xff]  ;;  %v887_v32 = vld [vmem:[%s1315_s24 + $0x50] sm:$0xff]  ;;  %s1098_s29 = sshll.u32 %s1822_s28, 8  ;;  %s1815_s26 = smov %s1822_s28 }
 0x1bf   : >> { %884 = vst [vmem:[%s1311_s3 + $0x40] sm:$0xff] %v883_v30  ;;  %v889_v33 = vld [vmem:[%s1315_s24 + $0x58] sm:$0xff]  ;;  %886 = vst [vmem:[%s1311_s3 + $0x48] sm:$0xff] %v885_v31  ;;  %v891_v34 = vld [vmem:[%s1315_s24 + $0x60] sm:$0xff]  ;;  %s1746_s30 = scalar_lea.vmem %s1570_s14, %s1098_s29 [#allocation3]   ;;  %s937_s5 = scalar_lea.vmem %s1673_s21, %s1098_s29  }
 0x1c0   : >> { %888 = vst [vmem:[%s1311_s3 + $0x50] sm:$0xff] %v887_v32  ;;  %890 = vst [vmem:[%s1311_s3 + $0x58] sm:$0xff] %v889_v33  ;;  %v893_v35 = vld [vmem:[%s1315_s24 + $0x68] sm:$0xff]  ;;  %v895_v36 = vld [vmem:[%s1315_s24 + $0x70] sm:$0xff] }
 0x1c1   : >> { %892 = vst [vmem:[%s1311_s3 + $0x60] sm:$0xff] %v891_v34  ;;  %894 = vst [vmem:[%s1311_s3 + $0x68] sm:$0xff] %v893_v35  ;;  %v897_v37 = vld [vmem:[%s1315_s24 + $0x78] sm:$0xff]  ;;  %v899_v38 = vld [vmem:[%s1315_s24 + $0x80] sm:$0xff] }
 0x1c2   : >> { %896 = vst [vmem:[%s1311_s3 + $0x70] sm:$0xff] %v895_v36  ;;  %v901_v39 = vld [vmem:[%s1315_s24 + $0x88] sm:$0xff]  ;;  %898 = vst [vmem:[%s1311_s3 + $0x78] sm:$0xff] %v897_v37  ;;  %v903_v40 = vld [vmem:[%s1315_s24 + $0x90] sm:$0xff] }
 0x1c3   : >> { %900 = vst [vmem:[%s1311_s3 + $0x80] sm:$0xff] %v899_v38  ;;  %902 = vst [vmem:[%s1311_s3 + $0x88] sm:$0xff] %v901_v39  ;;  %v905_v41 = vld [vmem:[%s1315_s24 + $0x98] sm:$0xff]  ;;  %v907_v42 = vld [vmem:[%s1315_s24 + $0xa0] sm:$0xff] }
 0x1c4   : >> { %904 = vst [vmem:[%s1311_s3 + $0x90] sm:$0xff] %v903_v40  ;;  %906 = vst [vmem:[%s1311_s3 + $0x98] sm:$0xff] %v905_v41  ;;  %v909_v43 = vld [vmem:[%s1315_s24 + $0xa8] sm:$0xff]  ;;  %v911_v44 = vld [vmem:[%s1315_s24 + $0xb0] sm:$0xff] }
 0x1c5   : >> { %908 = vst [vmem:[%s1311_s3 + $0xa0] sm:$0xff] %v907_v42  ;;  %v913_v45 = vld [vmem:[%s1315_s24 + $0xb8] sm:$0xff]  ;;  %910 = vst [vmem:[%s1311_s3 + $0xa8] sm:$0xff] %v909_v43  ;;  %v915_v46 = vld [vmem:[%s1315_s24 + $0xc0] sm:$0xff] }
 0x1c6   : >> { %912 = vst [vmem:[%s1311_s3 + $0xb0] sm:$0xff] %v911_v44  ;;  %914 = vst [vmem:[%s1311_s3 + $0xb8] sm:$0xff] %v913_v45  ;;  %v917_v47 = vld [vmem:[%s1315_s24 + $0xc8] sm:$0xff]  ;;  %v919_v48 = vld [vmem:[%s1315_s24 + $0xd0] sm:$0xff]  ;;  %863 = sbr.rel (!%p860_p12) target bundleno = 442 (0x1ba), region = 126 }
 0x1c7   : >> { %916 = vst [vmem:[%s1311_s3 + $0xc0] sm:$0xff] %v915_v46  ;;  %918 = vst [vmem:[%s1311_s3 + $0xc8] sm:$0xff] %v917_v47  ;;  %v921_v50 = vld [vmem:[%s1315_s24 + $0xd8] sm:$0xff]  ;;  %v923_v51 = vld [vmem:[%s1315_s24 + $0xe0] sm:$0xff] }
 0x1c8   : >> { %920 = vst [vmem:[%s1311_s3 + $0xd0] sm:$0xff] %v919_v48  ;;  %v925_v52 = vld [vmem:[%s1315_s24 + $0xe8] sm:$0xff]  ;;  %922 = vst [vmem:[%s1311_s3 + $0xd8] sm:$0xff] %v921_v50  ;;  %v927_v53 = vld [vmem:[%s1315_s24 + $0xf0] sm:$0xff] }
 0x1c9   : >> { %924 = vst [vmem:[%s1311_s3 + $0xe0] sm:$0xff] %v923_v51  ;;  %926 = vst [vmem:[%s1311_s3 + $0xe8] sm:$0xff] %v925_v52  ;;  %v929_v54 = vld [vmem:[%s1315_s24 + $0xf8] sm:$0xff]  ;;  %s1814_s24 = smov %s1746_s30 }
 0x1ca   : >> { %928 = vst [vmem:[%s1311_s3 + $0xf0] sm:$0xff] %v927_v53  ;;  %930 = vst [vmem:[%s1311_s3 + $0xf8] sm:$0xff] %v929_v54  ;;  %s1813_s3 = smov %s937_s5 }
 0x1cb PF: > { %s1787_s6 = sand.u32 31, %s1820_s15   ;;  %s1109_s7 = sshll.u32 %s1679_s25, 8 }
 0x1cc   : > { %s942_s8 = scalar_lea.vmem %s1570_s14, %s1109_s7 [#allocation3]   ;;  %s944_s9 = scalar_lea.vmem %s1673_s21, %s1109_s7  }
 0x1cd   : > { %p1103_p13 = scmp.le.s32.totalorder %s1787_s6, 0 }
 0x1ce   : > { %s1325_s10 = smov (!%p1103_p13), %s944_s9   ;;  %s1329_s11 = smov (!%p1103_p13), %s942_s8  }
 0x1cf   : > { %1035 = sbr.rel (%p1103_p13) target bundleno = 476 (0x1dc), region = 131  ;;  %s1333_s12 = smov (!%p1103_p13), 0  }
 0x1d0   : > { %s1337_s13 = smov (!%p1103_p13), 0  }
 0x1d4 LB: >> { %v954_v56 = vld [vmem:[%s1331_s11] sm:$0xff]  ;;  %s956_s15 = sadd.s32 1, %s1335_s12  ;;  %s948_s13 = sadd.s32 1, %s1339_s13   ;;  %s1339_s13 = sphi %s1337_s13, %s948_s13   ;;  %s1335_s12 = sphi %s1333_s12, %s1334_s12   ;;  %s1331_s11 = sphi %s1329_s11, %s961_s11   ;;  %s1327_s10 = sphi %s1325_s10, %s962_s10  }
 0x1d5   : >> { %955 = vst [vmem:[%s1327_s10] sm:$0xff] %v954_v56  ;;  %p957_p0 = scmp.ge.s32.totalorder %s956_s15, %s1787_s6  ;;  %p947_p1 = scmp.ge.s32.totalorder %s948_s13, %s1787_s6 }
 0x1d7   : >> { %s1824_s15 = smov (%p957_p0, %s956_s15), 0  ;;  %950 = sbr.rel (!%p947_p1) target bundleno = 468 (0x1d4), region = 137 }
 0x1d8   : >> { %s1104_s14 = sshll.u32 %s1824_s15, 3  ;;  %s1334_s12 = smov %s1824_s15  }
 0x1d9   : >> { %s961_s11 = scalar_lea.vmem %s942_s8, %s1104_s14 [#allocation3]   ;;  %s962_s10 = scalar_lea.vmem %s944_s9, %s1104_s14  }
 0x1dc PF: > { %p12_p2 = scmp.ge.s32.totalorder %s1384_s20, 4   ;;  %s1816_s17 = smov %s1303_s18 }
 0x1dd   : > { %s1817_s18 = smov %s1392_s23  ;;  %s1818_s19 = smov %s1384_s20 }
 0x1de   :  { %14 = sbr.rel (!%p12_p2) target bundleno = 4 (0x4), region = 148 }

</bundles_post_ra>
